<compile_context>
chip_gen: v7x
topology: tpu7x:2x2x1
jax: 0.10.0
libtpu: 0.0.40
codegen_flags: <defaults>
</compile_context>

<pallas_src>
import jax
import jax.numpy as jnp
from jax.experimental import pallas as pl
from jax.experimental.pallas import tpu as pltpu


def _round_up(a, m):
    return ((a + m - 1) // m) * m


def _make_kernel(activation, h1_dim, h2_dim):
    def kernel(x_ref, w1_ref, w2_ref, w3_ref, b_ref, o_ref):
        # Full f32 path: HBM-bound regime, so full-precision MXU passes are free and the
        # numerics match the f32 PyTorch module.
        x = x_ref[...]
        b = b_ref[...]                              # (1, H1+H2+C), single fused bias DMA
        b1 = b[:, :h1_dim]
        b2 = b[:, h1_dim:h1_dim + h2_dim]
        b3 = b[:, h1_dim + h2_dim:]
        h1 = activation(jnp.dot(x, w1_ref[...], preferred_element_type=jnp.float32) + b1)
        h2 = activation(jnp.dot(h1, w2_ref[...], preferred_element_type=jnp.float32) + b2)
        z = jnp.dot(h2, w3_ref[...], preferred_element_type=jnp.float32) + b3
        # sigmoid(z) = 1 / (1 + exp(-z)); exp + approx reciprocal both go to the EUP slot.
        o_ref[...] = pl.reciprocal(1.0 + jnp.exp(-z), approx=True)

    return kernel


def nn_classifier_forward(x, w1, b1, w2, b2, w3, b3, *,
                          activation=jax.nn.relu, tile_b=None):
    """Fused 3-layer MLP forward (Linear->act, Linear->act, Linear->sigmoid).

    x: [B, F] float32; weights are [in, out]; biases [out] or [1, out]. Returns [B, C] float32.
    """
    B, F = x.shape
    H1 = w1.shape[1]
    H2 = w2.shape[1]
    C = w3.shape[1]

    # One fused bias row -> a single constant-index DMA instead of three.
    b_cat = jnp.concatenate(
        [b1.reshape(1, H1), b2.reshape(1, H2), b3.reshape(1, C)], axis=1
    ).astype(jnp.float32)

    # ---- per-generation VMEM / tile sizing -------------------------------------------------
    try:
        vmem_cap = int(pltpu.get_tpu_info().vmem_capacity_bytes)
    except Exception:
        vmem_cap = 64 * 1024 * 1024              # conservative: v7x per-TensorCore VMEM
    vmem_limit = int(vmem_cap * 0.85)            # headroom for Mosaic internal scratch

    if tile_b is None:
        # 128-MiB parts (v5e/v6e): large tiles; 64-MiB parts (v7x): smaller cap, avoid spills.
        tile_cap = 4096 if vmem_cap >= 96 * 1024 * 1024 else 2048
        weight_bytes = 4 * (F * H1 + H1 * H2 + H2 * C + (H1 + H2 + C))
        # Per-row VMEM: double-buffered x / out tiles + materialized f32 h1/h2 intermediates.
        per_row = 4 * (2 * F + 2 * C + H1 + H2)
        budget = max(int(0.6 * vmem_limit) - 2 * weight_bytes, 8 * per_row)
        tile_b = min(tile_cap, budget // per_row)

    tb = max(8, (int(tile_b) // 8) * 8)
    # Guarantee >= 2 grid steps when the batch allows it so ("parallel",) can shard across
    # both v7x TensorCores even for mid-size batches.
    tb = min(tb, max(8, _round_up(pl.cdiv(B, 2), 8)))
    if B < 8:
        tb = B                                   # block dim equal to full array dim is legal
    grid = (pl.cdiv(B, tb),)                     # ragged last tile handled by Pallas; no jnp.pad

    kernel = _make_kernel(activation, H1, H2)

    def build(single_buffer_weights):
        def wspec(shape):
            # Constant block index -> stays VMEM-resident across all grid steps (no per-step
            # DMA).  Buffered(1): double-buffering a never-changing operand is pure VMEM waste.
            if single_buffer_weights:
                return pl.BlockSpec(shape, lambda i: (0,) * len(shape),
                                    pipeline_mode=pl.Buffered(1))
            return pl.BlockSpec(shape, lambda i: (0,) * len(shape))

        return pl.pallas_call(
            kernel,
            out_shape=jax.ShapeDtypeStruct((B, C), jnp.float32),
            grid_spec=pltpu.PrefetchScalarGridSpec(
                num_scalar_prefetch=0,
                grid=grid,
                in_specs=[
                    pl.BlockSpec((tb, F), lambda i: (i, 0)),   # streamed f32 x tile
                    wspec((F, H1)),                            # w1
                    wspec((H1, H2)),                           # w2
                    wspec((H2, C)),                            # w3 (no 128-lane padding)
                    wspec((1, H1 + H2 + C)),                   # fused biases
                ],
                # Exact (B, C) output: no column padding, no wrapper slice pass.
                out_specs=pl.BlockSpec((tb, C), lambda i: (i, 0)),
            ),
            compiler_params=pltpu.CompilerParams(
                dimension_semantics=("parallel",),
                vmem_limit_bytes=vmem_limit,
            ),
        )

    try:
        return build(True)(x, w1, w2, w3, b_cat)
    except Exception:
        # pipeline_mode=pl.Buffered(1) unsupported on this Pallas version -> default buffering.
        return build(False)(x, w1, w2, w3, b_cat)


if __name__ == "__main__":
    # Small, MLP-appropriate shapes.
    batch = 8
    n_features = 32
    hidden_size1 = 64
    hidden_size2 = 32
    n_classes = 8

    key = jax.random.PRNGKey(0)
    kx, k1, kb1, k2, kb2, k3, kb3 = jax.random.split(key, 7)

    x = jax.random.normal(kx, (batch, n_features), dtype=jnp.float32)

    # Deterministic parameter init (uniform, scaled like PyTorch Linear default).
    def init_linear(kw, kb, fan_in, fan_out):
        bound = float(fan_in) ** -0.5
        w = jax.random.uniform(kw, (fan_in, fan_out), minval=-bound, maxval=bound,
                               dtype=jnp.float32)
        b = jax.random.uniform(kb, (1, fan_out), minval=-bound, maxval=bound,
                               dtype=jnp.float32)
        return w, b

    w1, b1 = init_linear(k1, kb1, n_features, hidden_size1)
    w2, b2 = init_linear(k2, kb2, hidden_size1, hidden_size2)
    w3, b3 = init_linear(k3, kb3, hidden_size2, n_classes)

    out = nn_classifier_forward(x, w1, b1, w2, b2, w3, b3, activation=jax.nn.relu)
    out = jax.block_until_ready(out)

    # Pure-f32 JAX reference matching the PyTorch module (ReLU activation, exact sigmoid).
    h1 = jnp.maximum(x @ w1 + b1, 0.0)
    h2 = jnp.maximum(h1 @ w2 + b2, 0.0)
    ref = jax.nn.sigmoid(h2 @ w3 + b3)

    assert out.shape == (batch, n_classes)
    assert bool(jnp.all(jnp.isfinite(out)))
    # Only divergence from the exact f32 reference is the EUP approx reciprocal in the sigmoid.
    assert jnp.allclose(out, ref, atol=5e-3, rtol=0.0), "mismatch vs f32 reference"

    print("KERNEL_OK")
</pallas_src>

<mosaic_0001>
module attributes {stable_mosaic.version = 11 : i64} {
  func.func @kernel(%arg0: i32, %arg1: memref<8x32xf32, #tpu.memory_space<vmem>>, %arg2: memref<32x64xf32, #tpu.memory_space<vmem>>, %arg3: memref<64x32xf32, #tpu.memory_space<vmem>>, %arg4: memref<32x8xf32, #tpu.memory_space<vmem>>, %arg5: memref<1x104xf32, #tpu.memory_space<vmem>>, %arg6: memref<8x8xf32, #tpu.memory_space<vmem>>) attributes {dimension_semantics = [#tpu.dimension_semantics<parallel>], iteration_bounds = array<i64: 1>, scalar_prefetch = 0 : i64, scratch_operands = 0 : i64, tpu.core_type = #tpu.core_type<tc>, window_params = [{transform_indices = @transform_0, window_bounds = array<i64: 8, 32>}, {pipeline_mode = #tpu.pipeline_mode<synchronous>, transform_indices = @transform_1, window_bounds = array<i64: 32, 64>}, {pipeline_mode = #tpu.pipeline_mode<synchronous>, transform_indices = @transform_2, window_bounds = array<i64: 64, 32>}, {pipeline_mode = #tpu.pipeline_mode<synchronous>, transform_indices = @transform_3, window_bounds = array<i64: 32, 8>}, {pipeline_mode = #tpu.pipeline_mode<synchronous>, transform_indices = @transform_4, window_bounds = array<i64: 1, 104>}, {transform_indices = @transform_5, window_bounds = array<i64: 8, 8>}]} {
    %c0 = arith.constant 0 : index
    %c0_0 = arith.constant 0 : index
    %0 = vector.load %arg1[%c0, %c0_0] : memref<8x32xf32, #tpu.memory_space<vmem>>, vector<8x32xf32>
    %c0_1 = arith.constant 0 : index
    %c0_2 = arith.constant 0 : index
    %1 = vector.load %arg5[%c0_1, %c0_2] : memref<1x104xf32, #tpu.memory_space<vmem>>, vector<1x104xf32>
    %2 = vector.extract_strided_slice %1 {offsets = [0, 0], sizes = [1, 64], strides = [1, 1]} : vector<1x104xf32> to vector<1x64xf32>
    %3 = vector.extract_strided_slice %1 {offsets = [0, 64], sizes = [1, 32], strides = [1, 1]} : vector<1x104xf32> to vector<1x32xf32>
    %4 = vector.extract_strided_slice %1 {offsets = [0, 96], sizes = [1, 8], strides = [1, 1]} : vector<1x104xf32> to vector<1x8xf32>
    %c0_3 = arith.constant 0 : index
    %c0_4 = arith.constant 0 : index
    %5 = vector.load %arg2[%c0_3, %c0_4] : memref<32x64xf32, #tpu.memory_space<vmem>>, vector<32x64xf32>
    %cst = arith.constant dense<0.000000e+00> : vector<8x64xf32>
    %6 = tpu.matmul %0, %5, %cst {dimension_numbers = #tpu.dot_dimension_numbers<[1], [0], [0], [1], [0, 0, 1, 1], [], []>} : vector<8x32xf32>, vector<32x64xf32>, vector<8x64xf32> -> vector<8x64xf32>
    %7 = vector.broadcast %2 : vector<1x64xf32> to vector<8x64xf32>
    %8 = arith.addf %6, %7 : vector<8x64xf32>
    %cst_5 = arith.constant 0.000000e+00 : f32
    %9 = vector.broadcast %cst_5 : f32 to vector<8x64xf32>
    %10 = arith.maximumf %8, %9 : vector<8x64xf32>
    %c0_6 = arith.constant 0 : index
    %c0_7 = arith.constant 0 : index
    %11 = vector.load %arg3[%c0_6, %c0_7] : memref<64x32xf32, #tpu.memory_space<vmem>>, vector<64x32xf32>
    %cst_8 = arith.constant dense<0.000000e+00> : vector<8x32xf32>
    %12 = tpu.matmul %10, %11, %cst_8 {dimension_numbers = #tpu.dot_dimension_numbers<[1], [0], [0], [1], [0, 0, 1, 1], [], []>} : vector<8x64xf32>, vector<64x32xf32>, vector<8x32xf32> -> vector<8x32xf32>
    %13 = vector.broadcast %3 : vector<1x32xf32> to vector<8x32xf32>
    %14 = arith.addf %12, %13 : vector<8x32xf32>
    %cst_9 = arith.constant 0.000000e+00 : f32
    %15 = vector.broadcast %cst_9 : f32 to vector<8x32xf32>
    %16 = arith.maximumf %14, %15 : vector<8x32xf32>
    %c0_10 = arith.constant 0 : index
    %c0_11 = arith.constant 0 : index
    %17 = vector.load %arg4[%c0_10, %c0_11] : memref<32x8xf32, #tpu.memory_space<vmem>>, vector<32x8xf32>
    %cst_12 = arith.constant dense<0.000000e+00> : vector<8x8xf32>
    %18 = tpu.matmul %16, %17, %cst_12 {dimension_numbers = #tpu.dot_dimension_numbers<[1], [0], [0], [1], [0, 0, 1, 1], [], []>} : vector<8x32xf32>, vector<32x8xf32>, vector<8x8xf32> -> vector<8x8xf32>
    %19 = vector.broadcast %4 : vector<1x8xf32> to vector<8x8xf32>
    %20 = arith.addf %18, %19 : vector<8x8xf32>
    %cst_13 = arith.constant 0.000000e+00 : f32
    %21 = vector.broadcast %cst_13 : f32 to vector<8x8xf32>
    %22 = arith.subf %21, %20 : vector<8x8xf32>
    %23 = math.exp %22 : vector<8x8xf32>
    %cst_14 = arith.constant 1.000000e+00 : f32
    %24 = vector.broadcast %cst_14 : f32 to vector<8x8xf32>
    %25 = arith.addf %24, %23 : vector<8x8xf32>
    %26 = tpu.reciprocal %25 {approx = true} : vector<8x8xf32> -> vector<8x8xf32>
    %c0_15 = arith.constant 0 : index
    %c0_16 = arith.constant 0 : index
    %27 = vector.load %arg6[%c0_15, %c0_16] : memref<8x8xf32, #tpu.memory_space<vmem>>, vector<8x8xf32>
    tpu.vector_store %arg6[%c0_15, %c0_16], %26 {strides = array<i32>} : memref<8x8xf32, #tpu.memory_space<vmem>>, vector<8x8xf32>,
    return
  }
  func.func @transform_0(%arg0: i32) -> (i32, i32) {
    %c0_i32 = arith.constant 0 : i32
    %c0_i32_0 = arith.constant 0 : i32
    return %arg0, %c0_i32 : i32, i32
  }
  func.func @transform_1(%arg0: i32) -> (i32, i32) {
    %c0_i32 = arith.constant 0 : i32
    %c0_i32_0 = arith.constant 0 : i32
    %c0_i32_1 = arith.constant 0 : i32
    return %c0_i32, %c0_i32_0 : i32, i32
  }
  func.func @transform_2(%arg0: i32) -> (i32, i32) {
    %c0_i32 = arith.constant 0 : i32
    %c0_i32_0 = arith.constant 0 : i32
    %c0_i32_1 = arith.constant 0 : i32
    return %c0_i32, %c0_i32_0 : i32, i32
  }
  func.func @transform_3(%arg0: i32) -> (i32, i32) {
    %c0_i32 = arith.constant 0 : i32
    %c0_i32_0 = arith.constant 0 : i32
    %c0_i32_1 = arith.constant 0 : i32
    return %c0_i32, %c0_i32_0 : i32, i32
  }
  func.func @transform_4(%arg0: i32) -> (i32, i32) {
    %c0_i32 = arith.constant 0 : i32
    %c0_i32_0 = arith.constant 0 : i32
    %c0_i32_1 = arith.constant 0 : i32
    return %c0_i32, %c0_i32_0 : i32, i32
  }
  func.func @transform_5(%arg0: i32) -> (i32, i32) {
    %c0_i32 = arith.constant 0 : i32
    %c0_i32_0 = arith.constant 0 : i32
    return %arg0, %c0_i32 : i32, i32
  }
}

module attributes {stable_mosaic.version = 11 : i64} {
  func.func @kernel(%arg0: i32, %arg1: memref<8x32xf32, #tpu.memory_space<vmem>>, %arg2: memref<32x64xf32, #tpu.memory_space<vmem>>, %arg3: memref<64x32xf32, #tpu.memory_space<vmem>>, %arg4: memref<32x8xf32, #tpu.memory_space<vmem>>, %arg5: memref<1x104xf32, #tpu.memory_space<vmem>>, %arg6: memref<8x8xf32, #tpu.memory_space<vmem>>) attributes {dimension_semantics = [#tpu.dimension_semantics<parallel>], iteration_bounds = array<i64: 1>, scalar_prefetch = 0 : i64, scratch_operands = 0 : i64, tpu.core_type = #tpu.core_type<tc>, window_params = [{transform_indices = @transform_0, window_bounds = array<i64: 8, 32>}, {pipeline_mode = #tpu.pipeline_mode<synchronous>, transform_indices = @transform_1, window_bounds = array<i64: 32, 64>}, {pipeline_mode = #tpu.pipeline_mode<synchronous>, transform_indices = @transform_2, window_bounds = array<i64: 64, 32>}, {pipeline_mode = #tpu.pipeline_mode<synchronous>, transform_indices = @transform_3, window_bounds = array<i64: 32, 8>}, {pipeline_mode = #tpu.pipeline_mode<synchronous>, transform_indices = @transform_4, window_bounds = array<i64: 1, 104>}, {transform_indices = @transform_5, window_bounds = array<i64: 8, 8>}]} {
    %c0 = arith.constant 0 : index
    %c0_0 = arith.constant 0 : index
    %0 = vector.load %arg1[%c0, %c0_0] : memref<8x32xf32, #tpu.memory_space<vmem>>, vector<8x32xf32>
    %c0_1 = arith.constant 0 : index
    %c0_2 = arith.constant 0 : index
    %1 = vector.load %arg5[%c0_1, %c0_2] : memref<1x104xf32, #tpu.memory_space<vmem>>, vector<1x104xf32>
    %2 = vector.extract_strided_slice %1 {offsets = [0, 0], sizes = [1, 64], strides = [1, 1]} : vector<1x104xf32> to vector<1x64xf32>
    %3 = vector.extract_strided_slice %1 {offsets = [0, 64], sizes = [1, 32], strides = [1, 1]} : vector<1x104xf32> to vector<1x32xf32>
    %4 = vector.extract_strided_slice %1 {offsets = [0, 96], sizes = [1, 8], strides = [1, 1]} : vector<1x104xf32> to vector<1x8xf32>
    %c0_3 = arith.constant 0 : index
    %c0_4 = arith.constant 0 : index
    %5 = vector.load %arg2[%c0_3, %c0_4] : memref<32x64xf32, #tpu.memory_space<vmem>>, vector<32x64xf32>
    %cst = arith.constant dense<0.000000e+00> : vector<8x64xf32>
    %6 = tpu.matmul %0, %5, %cst {dimension_numbers = #tpu.dot_dimension_numbers<[1], [0], [0], [1], [0, 0, 1, 1], [], []>} : vector<8x32xf32>, vector<32x64xf32>, vector<8x64xf32> -> vector<8x64xf32>
    %7 = vector.broadcast %2 : vector<1x64xf32> to vector<8x64xf32>
    %8 = arith.addf %6, %7 : vector<8x64xf32>
    %cst_5 = arith.constant 0.000000e+00 : f32
    %9 = vector.broadcast %cst_5 : f32 to vector<8x64xf32>
    %10 = arith.maximumf %8, %9 : vector<8x64xf32>
    %c0_6 = arith.constant 0 : index
    %c0_7 = arith.constant 0 : index
    %11 = vector.load %arg3[%c0_6, %c0_7] : memref<64x32xf32, #tpu.memory_space<vmem>>, vector<64x32xf32>
    %cst_8 = arith.constant dense<0.000000e+00> : vector<8x32xf32>
    %12 = tpu.matmul %10, %11, %cst_8 {dimension_numbers = #tpu.dot_dimension_numbers<[1], [0], [0], [1], [0, 0, 1, 1], [], []>} : vector<8x64xf32>, vector<64x32xf32>, vector<8x32xf32> -> vector<8x32xf32>
    %13 = vector.broadcast %3 : vector<1x32xf32> to vector<8x32xf32>
    %14 = arith.addf %12, %13 : vector<8x32xf32>
    %cst_9 = arith.constant 0.000000e+00 : f32
    %15 = vector.broadcast %cst_9 : f32 to vector<8x32xf32>
    %16 = arith.maximumf %14, %15 : vector<8x32xf32>
    %c0_10 = arith.constant 0 : index
    %c0_11 = arith.constant 0 : index
    %17 = vector.load %arg4[%c0_10, %c0_11] : memref<32x8xf32, #tpu.memory_space<vmem>>, vector<32x8xf32>
    %cst_12 = arith.constant dense<0.000000e+00> : vector<8x8xf32>
    %18 = tpu.matmul %16, %17, %cst_12 {dimension_numbers = #tpu.dot_dimension_numbers<[1], [0], [0], [1], [0, 0, 1, 1], [], []>} : vector<8x32xf32>, vector<32x8xf32>, vector<8x8xf32> -> vector<8x8xf32>
    %19 = vector.broadcast %4 : vector<1x8xf32> to vector<8x8xf32>
    %20 = arith.addf %18, %19 : vector<8x8xf32>
    %cst_13 = arith.constant 0.000000e+00 : f32
    %21 = vector.broadcast %cst_13 : f32 to vector<8x8xf32>
    %22 = arith.subf %21, %20 : vector<8x8xf32>
    %23 = math.exp %22 : vector<8x8xf32>
    %cst_14 = arith.constant 1.000000e+00 : f32
    %24 = vector.broadcast %cst_14 : f32 to vector<8x8xf32>
    %25 = arith.addf %24, %23 : vector<8x8xf32>
    %26 = tpu.reciprocal %25 {approx = true} : vector<8x8xf32> -> vector<8x8xf32>
    %c0_15 = arith.constant 0 : index
    %c0_16 = arith.constant 0 : index
    %27 = vector.load %arg6[%c0_15, %c0_16] : memref<8x8xf32, #tpu.memory_space<vmem>>, vector<8x8xf32>
    tpu.vector_store %arg6[%c0_15, %c0_16], %26 {strides = array<i32>} : memref<8x8xf32, #tpu.memory_space<vmem>>, vector<8x8xf32>,
    return
  }
  func.func @transform_0(%arg0: i32) -> (i32, i32) {
    %c0_i32 = arith.constant 0 : i32
    %c0_i32_0 = arith.constant 0 : i32
    return %arg0, %c0_i32 : i32, i32
  }
  func.func @transform_1(%arg0: i32) -> (i32, i32) {
    %c0_i32 = arith.constant 0 : i32
    %c0_i32_0 = arith.constant 0 : i32
    %c0_i32_1 = arith.constant 0 : i32
    return %c0_i32, %c0_i32_0 : i32, i32
  }
  func.func @transform_2(%arg0: i32) -> (i32, i32) {
    %c0_i32 = arith.constant 0 : i32
    %c0_i32_0 = arith.constant 0 : i32
    %c0_i32_1 = arith.constant 0 : i32
    return %c0_i32, %c0_i32_0 : i32, i32
  }
  func.func @transform_3(%arg0: i32) -> (i32, i32) {
    %c0_i32 = arith.constant 0 : i32
    %c0_i32_0 = arith.constant 0 : i32
    %c0_i32_1 = arith.constant 0 : i32
    return %c0_i32, %c0_i32_0 : i32, i32
  }
  func.func @transform_4(%arg0: i32) -> (i32, i32) {
    %c0_i32 = arith.constant 0 : i32
    %c0_i32_0 = arith.constant 0 : i32
    %c0_i32_1 = arith.constant 0 : i32
    return %c0_i32, %c0_i32_0 : i32, i32
  }
  func.func @transform_5(%arg0: i32) -> (i32, i32) {
    %c0_i32 = arith.constant 0 : i32
    %c0_i32_0 = arith.constant 0 : i32
    return %arg0, %c0_i32 : i32, i32
  }
}

</mosaic_0001>

<bundles_post_ra>
// kernel: tpu_custom_call.1
= control target key start
LH: loop header
LB: loop body
LE: loop exit
PB: predicated region body
PF: predicated region fallthrough
CT: control target
= control target key end

     0   :  { %v417_v3 = vmov 0.0|0.0   ;;  %vm418_vm0 = vmmov 0   ;;  %v419_v6 = vmov 0.0   ;;  %s524_s0 = inlined_call_operand.vmem [shape: f32[8,32], index: 0, kind: input, shape index: {}]   ;;  %s525_s1 = inlined_call_operand.vmem [shape: f32[32,64], index: 1, kind: input, shape index: {}]   ;;  %s526_s2 = inlined_call_operand.vmem [shape: f32[64,32], index: 2, kind: input, shape index: {}]   ;;  %s527_s3 = inlined_call_operand.vmem [shape: f32[32,8], index: 3, kind: input, shape index: {}]   ;;  %s528_s4 = inlined_call_operand.vmem [shape: f32[1,104], index: 4, kind: input, shape index: {}]   ;;  %s529_s5 = inlined_call_operand.hbm [shape: f32[8,8], index: 5, kind: output, shape index: {}]  }
   0x1   :  { %v23_v0 = vld [vmem:[%s525_s1] sm:$0xff]  ;;  %v24_v1 = vld [vmem:[%s525_s1 + $0x8] sm:$0xff]  ;;  %v25_v2 = vld [vmem:[%s525_s1 + $0x10] sm:$0xff]  ;;  %359 = vmatprep.subr.bf16.mxu0 %v417_v3  ;;  %326 = vmatprep.mubr.msk.f32.mxu0 %vm418_vm0, %v419_v6 }
   0x2   :  { %v360_v4 = vpack.c.bf16 %v24_v1, %v23_v0  ;;  %v26_v5 = vld [vmem:[%s525_s1 + $0x18] sm:$0xff]  ;;  %v108_v7 = vld [vmem:[%s526_s2] sm:$0xff]  ;;  %365 = vmatprep.subr.bf16.mxu1 %v417_v3  ;;  %v109_v8 = vld [vmem:[%s526_s2 + $0x8] sm:$0xff]  ;;  %345 = vmatprep.mubr.msk.f32.mxu1 %vm418_vm0, %v419_v6 }
   0x3   :  { %v110_v9 = vld [vmem:[%s526_s2 + $0x10] sm:$0xff]  ;;  %v111_v10 = vld [vmem:[%s526_s2 + $0x18] sm:$0xff]  ;;  %v363_v11 = vpack.c.bf16 %v26_v5, %v25_v2  ;;  %v366_v12 = vpack.c.bf16 %v109_v8, %v108_v7 }
   0x4   :  { %361 = vmatpush3.bf16.msra.mxu0 %v360_v4 }
   0x5   :  { %362 = vmatprep.subr.bf16.mxu0 %v417_v3 }
   0x6   :  { %10 = vsyncpa [#allocation3], 0  ;;  %367 = vmatpush3.bf16.msra.mxu1 %v366_v12  ;;  %v369_v13 = vpack.c.bf16 %v111_v10, %v110_v9  ;;  %v112_v14 = vld [vmem:[%s526_s2 + $0x20] sm:$0xff]  ;;  %v113_v15 = vld [vmem:[%s526_s2 + $0x28] sm:$0xff]  ;;  %vm33_vm1 = vcmask 261120   ;;  %s420_s23 = smov 64  }
   0x7   :  { %368 = vmatprep.subr.bf16.mxu1 %v417_v3  ;;  %v21_v16 = vld [vmem:[%s524_s0] sm:$0xff]  ;;  %v372_v17 = vpack.c.bf16 %v113_v15, %v112_v14  ;;  %v114_v18 = vld [vmem:[%s526_s2 + $0x30] sm:$0xff]  ;;  %v115_v19 = vld [vmem:[%s526_s2 + $0x38] sm:$0xff]  ;;  %vm119_vm2 = vcmask 523264   ;;  %s421_s26 = smov 32   ;;  %vm279_vm3 = vcmask 64512  }
   0x8   :  { %364 = vmatpush3.bf16.msra.mxu0 %v363_v11  ;;  %v375_v20 = vpack.c.bf16 %v115_v19, %v114_v18  ;;  %v295_v21 = vld [vmem:[%s528_s4] ss:$0 sm:$0xff]  ;;  %v195_v23 = vld [vmem:[%s527_s3 + $0x8] sm:$0xff]  ;;  %v196_v29 = vld [vmem:[%s527_s3 + $0x10] sm:$0xff] }
   0x9   :  { %377 = vmatprep.subr.bf16.mxu0 %v417_v3  ;;  %v194_v22 = vld [vmem:[%s527_s3] sm:$0xff]  ;;  %116 = vrot.lane.b32.xlu0 %v295_v21, %s420_s23  ;;  %v197_v30 = vld [vmem:[%s527_s3 + $0x18] sm:$0xff]  ;;  %s422_s3 = smov [#allocation2]  }
   0xa   :  { %370 = vmatpush3.bf16.msra.mxu1 %v369_v13  ;;  %v378_v24 = vpack.c.bf16 %v195_v23, %v194_v22  ;;  %v381_v31 = vpack.c.bf16 %v197_v30, %v196_v29  ;;  %s287_s27 = sshll.u32 %s422_s3, 4  ;;  %s288_s27 = int_to_ptr.vmem [resolvable:$true] %s287_s27 }
   0xb   :  { %327 = vmatmul.mubr.msk.f32.vlgmr.msra.gmra.mrb[0].mxu0 %vm33_vm1, %v21_v16  ;;  %371 = vmatprep.subr.bf16.mxu1 %v417_v3  ;;  %s393_s28 = scalar_lea.vmem %s288_s27, 128  ;;  %p398_p1 = scmp.lt.s32.totalorder %s288_s27, %s288_s27 }
   0xc   :  { %356 = vmatprep.mubr.msk.f32.mxu0 %vm418_vm0, %v419_v6  ;;  %379 = vmatpush3.bf16.msra.mxu0 %v378_v24  ;;  %p394_p0 = scmp.ne.s32.totalorder %s288_s27, %s393_s28  ;;  %p399_p2 = scmp.lt.s32.totalorder %s393_s28, %s393_s28 }
   0xd   :  { %380 = vmatprep.subr.bf16.mxu0 %v417_v3  ;;  %198 = vrot.lane.b32.xlu0 %v295_v21, %s421_s26 }
   0xe   :  { %373 = vmatpush3.bf16.msra.mxu1 %v372_v17  ;;  %p400_p3 = por %p399_p2, %p398_p1 }
   0xf   :  { %374 = vmatprep.subr.bf16.mxu1 %v417_v3 }
  0x10   :  { %382 = vmatpush3.bf16.msra.mxu0 %v381_v31  ;;  %p401_p4 = pnand %p400_p3, %p394_p0 }
  0x12   :  { %376 = vmatpush3.bf16.msra.mxu1 %v375_v20 }
  0x7b   :  { %v117_v32 = vpop.permute.xlu0 %116 }
  0x7f   :  { %v199_v37 = vpop.permute.xlu0 %198 }
  0xde   :  { %v103_v25 = vpop.f32.mrb[0].mxu0 }
  0xdf   :  { %v104_v26 = vadd.f32 %v295_v21, %v103_v25  ;;  %v328_v27 = vpop.f32.mrb[1].mxu0 }
  0xe1   :  { %v107_v28 = vmax.f32 %v104_v26, 0.0 }
  0xe3   :  { %346 = vmatmul.mubr.msk.f32.vlgmr.msra.gmra.mrb[0].mxu1 %vm119_vm2, %v107_v28 }
 0x1b6   :  { %v189_v33 = vpop.f32.mrb[0].mxu1 }
 0x1b7   :  { %v190_v34 = vadd.f32 %v189_v33, %v117_v32  ;;  %v347_v35 = vpop.f32.mrb[1].mxu1 }
 0x1b9   :  { %v193_v36 = vmax.f32 %v190_v34, 0.0 }
 0x1bb   :  { %357 = vmatmul.mubr.msk.f32.vlgmr.msra.gmra.mrb[2].mxu0 %vm33_vm1, %v193_v36 }
 0x28e   :  { %v270_v38 = vpop.f32.mrb[2].mxu0 }
 0x28f   :  { %v271_v39 = vadd.f32 %v270_v38, %v199_v37  ;;  %v358_v40 = vpop.f32.mrb[3].mxu0 }
 0x291   :  { %v274_v41 = vsub.f32 0.0, %v271_v39 }
 0x293   :  { %v275_v42 = vmul.f32 1.442695, %v274_v41 }
 0x295   :  { %389 = vpow2.f32 %v275_v42 }
 0x29f   :  { %v390_v43 = vpop.eup %389 }
 0x2a0   :  { %v277_v44 = vadd.f32 1.0, %v390_v43 }
 0x2a2   :  { %391 = vrcp.f32 %v277_v44 }
 0x2ac   :  { %v392_v45 = vpop.eup %391 }
 0x2ad   :  { %280 = vst.msk [vmem:[#allocation2] sm:$0xff] %vm279_vm3, %v392_v45 }
 0x2ae   :  { %404 = shalt.err (!%p401_p4)
}
 0x2af   :  { %s405_s6 = scalar_lea.hbm %s529_s5, 128 }
 0x2b0   :  { %p406_p5 = scmp.ne.s32.totalorder %s529_s5, %s405_s6  ;;  %p409_p6 = scmp.lt.u32.totalorder %s405_s6, %s529_s5 }
 0x2b2   :  { %p411_p7 = pnand %p409_p6, %p406_p5 }
 0x2b4   :  { %414 = shalt.err (!%p411_p7)
}
 0x2b5   :  { %290 = dma.vmem_to_hbm [thread:$0]  %s288_s27, 128, %s529_s5, [#allocation3]  }
 0x2b6   :  { %415 = dma.done.wait [#allocation3], 128  }
 0x2b7   :  { %416 = vsyncadd [#allocation3], 4294967168 }
 0x2b8   :  { %294 = vsyncpa [#allocation3], 1 }

// kernel: tpu_custom_call.1
= control target key start
LH: loop header
LB: loop body
LE: loop exit
PB: predicated region body
PF: predicated region fallthrough
CT: control target
= control target key end

     0   :  { %v417_v3 = vmov 0.0|0.0   ;;  %vm418_vm0 = vmmov 0   ;;  %v419_v6 = vmov 0.0   ;;  %s524_s0 = inlined_call_operand.vmem [shape: f32[8,32], index: 0, kind: input, shape index: {}]   ;;  %s525_s1 = inlined_call_operand.vmem [shape: f32[32,64], index: 1, kind: input, shape index: {}]   ;;  %s526_s2 = inlined_call_operand.vmem [shape: f32[64,32], index: 2, kind: input, shape index: {}]   ;;  %s527_s3 = inlined_call_operand.vmem [shape: f32[32,8], index: 3, kind: input, shape index: {}]   ;;  %s528_s4 = inlined_call_operand.vmem [shape: f32[1,104], index: 4, kind: input, shape index: {}]   ;;  %s529_s5 = inlined_call_operand.hbm [shape: f32[8,8], index: 5, kind: output, shape index: {}]  }
   0x1   :  { %v23_v0 = vld [vmem:[%s525_s1] sm:$0xff]  ;;  %v24_v1 = vld [vmem:[%s525_s1 + $0x8] sm:$0xff]  ;;  %v25_v2 = vld [vmem:[%s525_s1 + $0x10] sm:$0xff]  ;;  %359 = vmatprep.subr.bf16.mxu0 %v417_v3  ;;  %326 = vmatprep.mubr.msk.f32.mxu0 %vm418_vm0, %v419_v6 }
   0x2   :  { %v360_v4 = vpack.c.bf16 %v24_v1, %v23_v0  ;;  %v26_v5 = vld [vmem:[%s525_s1 + $0x18] sm:$0xff]  ;;  %v108_v7 = vld [vmem:[%s526_s2] sm:$0xff]  ;;  %365 = vmatprep.subr.bf16.mxu1 %v417_v3  ;;  %v109_v8 = vld [vmem:[%s526_s2 + $0x8] sm:$0xff]  ;;  %345 = vmatprep.mubr.msk.f32.mxu1 %vm418_vm0, %v419_v6 }
   0x3   :  { %v110_v9 = vld [vmem:[%s526_s2 + $0x10] sm:$0xff]  ;;  %v111_v10 = vld [vmem:[%s526_s2 + $0x18] sm:$0xff]  ;;  %v363_v11 = vpack.c.bf16 %v26_v5, %v25_v2  ;;  %v366_v12 = vpack.c.bf16 %v109_v8, %v108_v7 }
   0x4   :  { %361 = vmatpush3.bf16.msra.mxu0 %v360_v4 }
   0x5   :  { %362 = vmatprep.subr.bf16.mxu0 %v417_v3 }
   0x6   :  { %10 = vsyncpa [#allocation3], 0  ;;  %367 = vmatpush3.bf16.msra.mxu1 %v366_v12  ;;  %v369_v13 = vpack.c.bf16 %v111_v10, %v110_v9  ;;  %v112_v14 = vld [vmem:[%s526_s2 + $0x20] sm:$0xff]  ;;  %v113_v15 = vld [vmem:[%s526_s2 + $0x28] sm:$0xff]  ;;  %vm33_vm1 = vcmask 261120   ;;  %s420_s23 = smov 64  }
   0x7   :  { %368 = vmatprep.subr.bf16.mxu1 %v417_v3  ;;  %v21_v16 = vld [vmem:[%s524_s0] sm:$0xff]  ;;  %v372_v17 = vpack.c.bf16 %v113_v15, %v112_v14  ;;  %v114_v18 = vld [vmem:[%s526_s2 + $0x30] sm:$0xff]  ;;  %v115_v19 = vld [vmem:[%s526_s2 + $0x38] sm:$0xff]  ;;  %vm119_vm2 = vcmask 523264   ;;  %s421_s26 = smov 32   ;;  %vm279_vm3 = vcmask 64512  }
   0x8   :  { %364 = vmatpush3.bf16.msra.mxu0 %v363_v11  ;;  %v375_v20 = vpack.c.bf16 %v115_v19, %v114_v18  ;;  %v295_v21 = vld [vmem:[%s528_s4] ss:$0 sm:$0xff]  ;;  %v195_v23 = vld [vmem:[%s527_s3 + $0x8] sm:$0xff]  ;;  %v196_v29 = vld [vmem:[%s527_s3 + $0x10] sm:$0xff] }
   0x9   :  { %377 = vmatprep.subr.bf16.mxu0 %v417_v3  ;;  %v194_v22 = vld [vmem:[%s527_s3] sm:$0xff]  ;;  %116 = vrot.lane.b32.xlu0 %v295_v21, %s420_s23  ;;  %v197_v30 = vld [vmem:[%s527_s3 + $0x18] sm:$0xff]  ;;  %s422_s3 = smov [#allocation2]  }
   0xa   :  { %370 = vmatpush3.bf16.msra.mxu1 %v369_v13  ;;  %v378_v24 = vpack.c.bf16 %v195_v23, %v194_v22  ;;  %v381_v31 = vpack.c.bf16 %v197_v30, %v196_v29  ;;  %s287_s27 = sshll.u32 %s422_s3, 4  ;;  %s288_s27 = int_to_ptr.vmem [resolvable:$true] %s287_s27 }
   0xb   :  { %327 = vmatmul.mubr.msk.f32.vlgmr.msra.gmra.mrb[0].mxu0 %vm33_vm1, %v21_v16  ;;  %371 = vmatprep.subr.bf16.mxu1 %v417_v3  ;;  %s393_s28 = scalar_lea.vmem %s288_s27, 128  ;;  %p398_p1 = scmp.lt.s32.totalorder %s288_s27, %s288_s27 }
   0xc   :  { %356 = vmatprep.mubr.msk.f32.mxu0 %vm418_vm0, %v419_v6  ;;  %379 = vmatpush3.bf16.msra.mxu0 %v378_v24  ;;  %p394_p0 = scmp.ne.s32.totalorder %s288_s27, %s393_s28  ;;  %p399_p2 = scmp.lt.s32.totalorder %s393_s28, %s393_s28 }
   0xd   :  { %380 = vmatprep.subr.bf16.mxu0 %v417_v3  ;;  %198 = vrot.lane.b32.xlu0 %v295_v21, %s421_s26 }
   0xe   :  { %373 = vmatpush3.bf16.msra.mxu1 %v372_v17  ;;  %p400_p3 = por %p399_p2, %p398_p1 }
   0xf   :  { %374 = vmatprep.subr.bf16.mxu1 %v417_v3 }
  0x10   :  { %382 = vmatpush3.bf16.msra.mxu0 %v381_v31  ;;  %p401_p4 = pnand %p400_p3, %p394_p0 }
  0x12   :  { %376 = vmatpush3.bf16.msra.mxu1 %v375_v20 }
  0x7b   :  { %v117_v32 = vpop.permute.xlu0 %116 }
  0x7f   :  { %v199_v37 = vpop.permute.xlu0 %198 }
  0xde   :  { %v103_v25 = vpop.f32.mrb[0].mxu0 }
  0xdf   :  { %v104_v26 = vadd.f32 %v295_v21, %v103_v25  ;;  %v328_v27 = vpop.f32.mrb[1].mxu0 }
  0xe1   :  { %v107_v28 = vmax.f32 %v104_v26, 0.0 }
  0xe3   :  { %346 = vmatmul.mubr.msk.f32.vlgmr.msra.gmra.mrb[0].mxu1 %vm119_vm2, %v107_v28 }
 0x1b6   :  { %v189_v33 = vpop.f32.mrb[0].mxu1 }
 0x1b7   :  { %v190_v34 = vadd.f32 %v189_v33, %v117_v32  ;;  %v347_v35 = vpop.f32.mrb[1].mxu1 }
 0x1b9   :  { %v193_v36 = vmax.f32 %v190_v34, 0.0 }
 0x1bb   :  { %357 = vmatmul.mubr.msk.f32.vlgmr.msra.gmra.mrb[2].mxu0 %vm33_vm1, %v193_v36 }
 0x28e   :  { %v270_v38 = vpop.f32.mrb[2].mxu0 }
 0x28f   :  { %v271_v39 = vadd.f32 %v270_v38, %v199_v37  ;;  %v358_v40 = vpop.f32.mrb[3].mxu0 }
 0x291   :  { %v274_v41 = vsub.f32 0.0, %v271_v39 }
 0x293   :  { %v275_v42 = vmul.f32 1.442695, %v274_v41 }
 0x295   :  { %389 = vpow2.f32 %v275_v42 }
 0x29f   :  { %v390_v43 = vpop.eup %389 }
 0x2a0   :  { %v277_v44 = vadd.f32 1.0, %v390_v43 }
 0x2a2   :  { %391 = vrcp.f32 %v277_v44 }
 0x2ac   :  { %v392_v45 = vpop.eup %391 }
 0x2ad   :  { %280 = vst.msk [vmem:[#allocation2] sm:$0xff] %vm279_vm3, %v392_v45 }
 0x2ae   :  { %404 = shalt.err (!%p401_p4)
}
 0x2af   :  { %s405_s6 = scalar_lea.hbm %s529_s5, 128 }
 0x2b0   :  { %p406_p5 = scmp.ne.s32.totalorder %s529_s5, %s405_s6  ;;  %p409_p6 = scmp.lt.u32.totalorder %s405_s6, %s529_s5 }
 0x2b2   :  { %p411_p7 = pnand %p409_p6, %p406_p5 }
 0x2b4   :  { %414 = shalt.err (!%p411_p7)
}
 0x2b5   :  { %290 = dma.vmem_to_hbm [thread:$0]  %s288_s27, 128, %s529_s5, [#allocation3]  }
 0x2b6   :  { %415 = dma.done.wait [#allocation3], 128  }
 0x2b7   :  { %416 = vsyncadd [#allocation3], 4294967168 }
 0x2b8   :  { %294 = vsyncpa [#allocation3], 1 }

</bundles_post_ra>
